<compile_context>
chip_gen: v7x
topology: tpu7x:2x2x1
jax: 0.10.0
libtpu: 0.0.40
codegen_flags: <defaults>
</compile_context>

<pallas_src>
import functools

import jax
import jax.numpy as jnp
from jax.experimental import pallas as pl
from jax.experimental.pallas import tpu as pltpu

LANE = 128              # TPU lane width: feature dims are padded to multiples of this.
MAX_BATCH_TILE = 2048   # upper bound on the batch tile (multiple of 8 sublanes)


def _round_up(x: int, m: int) -> int:
    return (x + m - 1) // m * m


def _leaky_relu(x, negative_slope=0.01):
    return jnp.where(x > 0, x, negative_slope * x)


def actor_ppo_kernel(x_ref, w0_ref, b0_ref, w1_ref, b1_ref, w2_ref, b2_ref,
                     out_ref):
    # Normalization is already folded into (w0, b0); all feature dims are
    # padded to 128 lanes, so every op below runs on dense vregs and the final
    # store is an unmasked, lane-dense vst.
    x = x_ref[...]
    h = jnp.dot(x, w0_ref[...], preferred_element_type=jnp.float32) + b0_ref[...]
    h = _leaky_relu(h)
    h = jnp.dot(h, w1_ref[...], preferred_element_type=jnp.float32) + b1_ref[...]
    h = _leaky_relu(h)
    y = jnp.dot(h, w2_ref[...], preferred_element_type=jnp.float32) + b2_ref[...]
    out_ref[...] = jnp.tanh(y)


def prepare_actor_ppo_params(params, state_avg, state_std, eps=1e-8):
    """Fold the state normalization into layer 0 and pad feature dims to 128.

    `params` holds weights as (in_dim, out_dim) (transposed vs PyTorch) and
    1-D biases. Returns padded arrays ready for the kernel. Done once, not per
    forward call.
    """
    w0, b0 = params["w0"], params["b0"]
    w1, b1 = params["w1"], params["b1"]
    w2, b2 = params["w2"], params["b2"]

    std = jnp.maximum(state_std, eps)              # guard against zero std
    w0f = w0 / std[:, None]
    b0f = b0 - (state_avg / std) @ w0

    s_dim = w0.shape[0]
    h0p = _round_up(w0.shape[1], LANE)
    h1p = _round_up(w1.shape[1], LANE)
    a_p = _round_up(w2.shape[1], LANE)

    def pad_w(w, rows, cols):
        return jnp.pad(w, ((0, rows - w.shape[0]), (0, cols - w.shape[1])))

    def pad_b(b, cols):
        return jnp.pad(b, (0, cols - b.shape[0])).reshape(1, cols)

    return {
        "w0": pad_w(w0f, s_dim, h0p), "b0": pad_b(b0f, h0p),
        "w1": pad_w(w1, h0p, h1p),    "b1": pad_b(b1, h1p),
        "w2": pad_w(w2, h1p, a_p),    "b2": pad_b(b2, a_p),
    }


@functools.partial(jax.jit, static_argnames=("action_dim",))
def actor_ppo_forward(state, prepped, action_dim):
    """state: (B, state_dim) f32. prepped: output of prepare_actor_ppo_params."""
    B, s_dim = state.shape
    a_pad = prepped["w2"].shape[1]
    h0p = prepped["w0"].shape[1]
    h1p = prepped["w1"].shape[1]

    # Batch tile: as large as reasonable (amortize ~0.35us per grid step),
    # multiple of 8 sublanes; tiny batches collapse to a single grid step.
    # Per-tile VMEM stays small even at MAX_BATCH_TILE, fitting v7x's budget.
    tb = min(MAX_BATCH_TILE, _round_up(B, 8))
    b_pad = _round_up(B, tb)
    if b_pad != B:
        state = jnp.pad(state, ((0, b_pad - B), (0, 0)))
    grid = (b_pad // tb,)

    # state/out stream through the pipeline; weights/biases are grid-invariant
    # (index_map -> (0, 0)) so Pallas keeps them VMEM-resident across steps.
    stream = lambda i: (i, 0)
    resident = lambda i: (0, 0)
    in_specs = [
        pl.BlockSpec((tb, s_dim), stream),
        pl.BlockSpec(prepped["w0"].shape, resident),
        pl.BlockSpec(prepped["b0"].shape, resident),
        pl.BlockSpec(prepped["w1"].shape, resident),
        pl.BlockSpec(prepped["b1"].shape, resident),
        pl.BlockSpec(prepped["w2"].shape, resident),
        pl.BlockSpec(prepped["b2"].shape, resident),
    ]
    out_spec = pl.BlockSpec((tb, a_pad), stream)

    weight_bytes = sum(int(v.size) * 4 for v in prepped.values())
    cost = pl.CostEstimate(
        flops=2 * b_pad * (s_dim * h0p + h0p * h1p + h1p * a_pad),
        transcendentals=b_pad * a_pad,                      # tanh
        bytes_accessed=4 * b_pad * (s_dim + a_pad) + weight_bytes,
    )

    out = pl.pallas_call(
        actor_ppo_kernel,
        out_shape=jax.ShapeDtypeStruct((b_pad, a_pad), jnp.float32),
        grid=grid,
        in_specs=in_specs,
        out_specs=out_spec,
        compiler_params=pltpu.CompilerParams(
            dimension_semantics=("parallel",)),             # megacore on v7x
        cost_estimate=cost,
    )(state, prepped["w0"], prepped["b0"], prepped["w1"], prepped["b1"],
      prepped["w2"], prepped["b2"])

    return out[:B, :action_dim]


def _orthogonal(key, shape, gain):
    # Mimics torch.nn.init.orthogonal_: QR of a Gaussian, sign-corrected, scaled.
    rows, cols = shape
    n = max(rows, cols)
    a = jax.random.normal(key, (n, n), dtype=jnp.float32)
    q, r = jnp.linalg.qr(a)
    q = q * jnp.sign(jnp.diag(r))[None, :]
    return gain * q[:rows, :cols]


def init_actor_ppo_params(key, state_dim, hidden_dims, action_dim):
    """Deterministic parameter init. Weights returned as (in_dim, out_dim)."""
    dims = [state_dim, *hidden_dims, action_dim]
    keys = jax.random.split(key, 2 * (len(dims) - 1))
    params = {}
    for i in range(len(dims) - 1):
        fan_in, fan_out = dims[i], dims[i + 1]
        kw, kb = keys[2 * i], keys[2 * i + 1]
        if i == len(dims) - 2:
            # last layer: orthogonal init with std=0.1, bias=1e-6
            w = _orthogonal(kw, (fan_in, fan_out), gain=0.1)
            b = jnp.full((fan_out,), 1e-6, dtype=jnp.float32)
        else:
            # default nn.Linear init: U(-1/sqrt(fan_in), 1/sqrt(fan_in))
            bound = 1.0 / jnp.sqrt(fan_in)
            w = jax.random.uniform(kw, (fan_in, fan_out), jnp.float32, -bound, bound)
            b = jax.random.uniform(kb, (fan_out,), jnp.float32, -bound, bound)
        params[f"w{i}"] = w
        params[f"b{i}"] = b
    return params


if __name__ == "__main__":
    key = jax.random.PRNGKey(0)
    k_state, k_params, k_avg, k_std = jax.random.split(key, 4)

    batch = 10            # deliberately not a multiple of 8: exercises batch padding
    state_dim = 16
    hidden_dims = (32, 32)
    action_dim = 4

    state = jax.random.normal(k_state, (batch, state_dim), dtype=jnp.float32)
    params = init_actor_ppo_params(k_params, state_dim, hidden_dims, action_dim)

    def ref_forward(s, avg, std):
        x = (s - avg) / std
        h = x @ params["w0"] + params["b0"]
        h = jnp.where(h > 0, h, 0.01 * h)
        h = h @ params["w1"] + params["b1"]
        h = jnp.where(h > 0, h, 0.01 * h)
        return jnp.tanh(h @ params["w2"] + params["b2"])

    # 1) Module defaults (ActorBase init): state_avg = 0, state_std = 1.
    avg0 = jnp.zeros((state_dim,), dtype=jnp.float32)
    std0 = jnp.ones((state_dim,), dtype=jnp.float32)
    prepped0 = prepare_actor_ppo_params(params, avg0, std0)
    out0 = actor_ppo_forward(state, prepped0, action_dim)
    jax.block_until_ready(out0)
    ref0 = ref_forward(state, avg0, std0)
    assert out0.shape == (batch, action_dim)
    assert jnp.allclose(out0, ref0, atol=1e-5, rtol=1e-5), \
        float(jnp.abs(out0 - ref0).max())

    # 2) Non-trivial running stats: validates the normalization-fold path
    #    (looser tolerance to stay robust to MXU matmul precision defaults).
    avg1 = 0.1 * jax.random.normal(k_avg, (state_dim,), dtype=jnp.float32)
    std1 = 1.0 + jax.random.uniform(k_std, (state_dim,), jnp.float32, 0.0, 0.5)
    prepped1 = prepare_actor_ppo_params(params, avg1, std1)
    out1 = actor_ppo_forward(state, prepped1, action_dim)
    jax.block_until_ready(out1)
    ref1 = ref_forward(state, avg1, std1)
    assert jnp.allclose(out1, ref1, atol=2e-2, rtol=2e-2), \
        float(jnp.abs(out1 - ref1).max())

    print("KERNEL_OK")
</pallas_src>

<mosaic_0001>
module attributes {stable_mosaic.version = 11 : i64} {
  func.func @actor_ppo_kernel(%arg0: i32, %arg1: memref<16x16xf32, #tpu.memory_space<vmem>>, %arg2: memref<16x128xf32, #tpu.memory_space<vmem>>, %arg3: memref<1x128xf32, #tpu.memory_space<vmem>>, %arg4: memref<128x128xf32, #tpu.memory_space<vmem>>, %arg5: memref<1x128xf32, #tpu.memory_space<vmem>>, %arg6: memref<128x128xf32, #tpu.memory_space<vmem>>, %arg7: memref<1x128xf32, #tpu.memory_space<vmem>>, %arg8: memref<16x128xf32, #tpu.memory_space<vmem>>) attributes {dimension_semantics = [#tpu.dimension_semantics<parallel>], iteration_bounds = array<i64: 1>, scalar_prefetch = 0 : i64, scratch_operands = 0 : i64, tpu.core_type = #tpu.core_type<tc>, window_params = [{transform_indices = @transform_0, window_bounds = array<i64: 16, 16>}, {pipeline_mode = #tpu.pipeline_mode<synchronous>, transform_indices = @transform_1, window_bounds = array<i64: 16, 128>}, {pipeline_mode = #tpu.pipeline_mode<synchronous>, transform_indices = @transform_2, window_bounds = array<i64: 1, 128>}, {pipeline_mode = #tpu.pipeline_mode<synchronous>, transform_indices = @transform_3, window_bounds = array<i64: 128, 128>}, {pipeline_mode = #tpu.pipeline_mode<synchronous>, transform_indices = @transform_4, window_bounds = array<i64: 1, 128>}, {pipeline_mode = #tpu.pipeline_mode<synchronous>, transform_indices = @transform_5, window_bounds = array<i64: 128, 128>}, {pipeline_mode = #tpu.pipeline_mode<synchronous>, transform_indices = @transform_6, window_bounds = array<i64: 1, 128>}, {transform_indices = @transform_7, window_bounds = array<i64: 16, 128>}]} {
    %c0 = arith.constant 0 : index
    %c0_0 = arith.constant 0 : index
    %0 = vector.load %arg1[%c0, %c0_0] : memref<16x16xf32, #tpu.memory_space<vmem>>, vector<16x16xf32>
    %c0_1 = arith.constant 0 : index
    %c0_2 = arith.constant 0 : index
    %1 = vector.load %arg2[%c0_1, %c0_2] : memref<16x128xf32, #tpu.memory_space<vmem>>, vector<16x128xf32>
    %cst = arith.constant dense<0.000000e+00> : vector<16x128xf32>
    %2 = tpu.matmul %0, %1, %cst {dimension_numbers = #tpu.dot_dimension_numbers<[1], [0], [0], [1], [0, 0, 1, 1], [], []>} : vector<16x16xf32>, vector<16x128xf32>, vector<16x128xf32> -> vector<16x128xf32>
    %c0_3 = arith.constant 0 : index
    %c0_4 = arith.constant 0 : index
    %3 = vector.load %arg3[%c0_3, %c0_4] : memref<1x128xf32, #tpu.memory_space<vmem>>, vector<1x128xf32>
    %4 = vector.broadcast %3 : vector<1x128xf32> to vector<16x128xf32>
    %5 = arith.addf %2, %4 : vector<16x128xf32>
    %cst_5 = arith.constant 0.000000e+00 : f32
    %6 = vector.broadcast %cst_5 : f32 to vector<16x128xf32>
    %7 = arith.cmpf ogt, %5, %6 : vector<16x128xf32>
    %cst_6 = arith.constant 0.00999999977 : f32
    %8 = vector.broadcast %cst_6 : f32 to vector<16x128xf32>
    %9 = arith.mulf %8, %5 : vector<16x128xf32>
    %10 = arith.select %7, %5, %9 : vector<16x128xi1>, vector<16x128xf32>
    %c0_7 = arith.constant 0 : index
    %c0_8 = arith.constant 0 : index
    %11 = vector.load %arg4[%c0_7, %c0_8] : memref<128x128xf32, #tpu.memory_space<vmem>>, vector<128x128xf32>
    %cst_9 = arith.constant dense<0.000000e+00> : vector<16x128xf32>
    %12 = tpu.matmul %10, %11, %cst_9 {dimension_numbers = #tpu.dot_dimension_numbers<[1], [0], [0], [1], [0, 0, 1, 1], [], []>} : vector<16x128xf32>, vector<128x128xf32>, vector<16x128xf32> -> vector<16x128xf32>
    %c0_10 = arith.constant 0 : index
    %c0_11 = arith.constant 0 : index
    %13 = vector.load %arg5[%c0_10, %c0_11] : memref<1x128xf32, #tpu.memory_space<vmem>>, vector<1x128xf32>
    %14 = vector.broadcast %13 : vector<1x128xf32> to vector<16x128xf32>
    %15 = arith.addf %12, %14 : vector<16x128xf32>
    %cst_12 = arith.constant 0.000000e+00 : f32
    %16 = vector.broadcast %cst_12 : f32 to vector<16x128xf32>
    %17 = arith.cmpf ogt, %15, %16 : vector<16x128xf32>
    %cst_13 = arith.constant 0.00999999977 : f32
    %18 = vector.broadcast %cst_13 : f32 to vector<16x128xf32>
    %19 = arith.mulf %18, %15 : vector<16x128xf32>
    %20 = arith.select %17, %15, %19 : vector<16x128xi1>, vector<16x128xf32>
    %c0_14 = arith.constant 0 : index
    %c0_15 = arith.constant 0 : index
    %21 = vector.load %arg6[%c0_14, %c0_15] : memref<128x128xf32, #tpu.memory_space<vmem>>, vector<128x128xf32>
    %cst_16 = arith.constant dense<0.000000e+00> : vector<16x128xf32>
    %22 = tpu.matmul %20, %21, %cst_16 {dimension_numbers = #tpu.dot_dimension_numbers<[1], [0], [0], [1], [0, 0, 1, 1], [], []>} : vector<16x128xf32>, vector<128x128xf32>, vector<16x128xf32> -> vector<16x128xf32>
    %c0_17 = arith.constant 0 : index
    %c0_18 = arith.constant 0 : index
    %23 = vector.load %arg7[%c0_17, %c0_18] : memref<1x128xf32, #tpu.memory_space<vmem>>, vector<1x128xf32>
    %24 = vector.broadcast %23 : vector<1x128xf32> to vector<16x128xf32>
    %25 = arith.addf %22, %24 : vector<16x128xf32>
    %26 = math.tanh %25 : vector<16x128xf32>
    %c0_19 = arith.constant 0 : index
    %c0_20 = arith.constant 0 : index
    %27 = vector.load %arg8[%c0_19, %c0_20] : memref<16x128xf32, #tpu.memory_space<vmem>>, vector<16x128xf32>
    tpu.vector_store %arg8[%c0_19, %c0_20], %26 {strides = array<i32>} : memref<16x128xf32, #tpu.memory_space<vmem>>, vector<16x128xf32>,
    return
  }
  func.func @transform_0(%arg0: i32) -> (i32, i32) {
    %c0_i32 = arith.constant 0 : i32
    %c0_i32_0 = arith.constant 0 : i32
    return %arg0, %c0_i32 : i32, i32
  }
  func.func @transform_1(%arg0: i32) -> (i32, i32) {
    %c0_i32 = arith.constant 0 : i32
    %c0_i32_0 = arith.constant 0 : i32
    %c0_i32_1 = arith.constant 0 : i32
    return %c0_i32, %c0_i32_0 : i32, i32
  }
  func.func @transform_2(%arg0: i32) -> (i32, i32) {
    %c0_i32 = arith.constant 0 : i32
    %c0_i32_0 = arith.constant 0 : i32
    %c0_i32_1 = arith.constant 0 : i32
    return %c0_i32, %c0_i32_0 : i32, i32
  }
  func.func @transform_3(%arg0: i32) -> (i32, i32) {
    %c0_i32 = arith.constant 0 : i32
    %c0_i32_0 = arith.constant 0 : i32
    %c0_i32_1 = arith.constant 0 : i32
    return %c0_i32, %c0_i32_0 : i32, i32
  }
  func.func @transform_4(%arg0: i32) -> (i32, i32) {
    %c0_i32 = arith.constant 0 : i32
    %c0_i32_0 = arith.constant 0 : i32
    %c0_i32_1 = arith.constant 0 : i32
    return %c0_i32, %c0_i32_0 : i32, i32
  }
  func.func @transform_5(%arg0: i32) -> (i32, i32) {
    %c0_i32 = arith.constant 0 : i32
    %c0_i32_0 = arith.constant 0 : i32
    %c0_i32_1 = arith.constant 0 : i32
    return %c0_i32, %c0_i32_0 : i32, i32
  }
  func.func @transform_6(%arg0: i32) -> (i32, i32) {
    %c0_i32 = arith.constant 0 : i32
    %c0_i32_0 = arith.constant 0 : i32
    %c0_i32_1 = arith.constant 0 : i32
    return %c0_i32, %c0_i32_0 : i32, i32
  }
  func.func @transform_7(%arg0: i32) -> (i32, i32) {
    %c0_i32 = arith.constant 0 : i32
    %c0_i32_0 = arith.constant 0 : i32
    return %arg0, %c0_i32 : i32, i32
  }
}

</mosaic_0001>

<bundles_post_ra>
// kernel: actor_ppo_forward.1
= control target key start
LH: loop header
LB: loop body
LE: loop exit
PB: predicated region body
PF: predicated region fallthrough
CT: control target
= control target key end

     0   :  { %12 = vsyncpa [#allocation3], 0  ;;  %s708_s0 = inlined_call_operand.vmem [shape: f32[16,16], index: 0, kind: input, shape index: {}]   ;;  %s709_s1 = inlined_call_operand.vmem [shape: f32[16,128], index: 1, kind: input, shape index: {}]   ;;  %s710_s2 = inlined_call_operand.vmem [shape: f32[1,128], index: 2, kind: input, shape index: {}]   ;;  %s711_s3 = inlined_call_operand.hbm [shape: f32[128,128], index: 3, kind: input, shape index: {}]   ;;  %s712_s4 = inlined_call_operand.vmem [shape: f32[1,128], index: 4, kind: input, shape index: {}]   ;;  %s713_s5 = inlined_call_operand.hbm [shape: f32[128,128], index: 5, kind: input, shape index: {}]   ;;  %s714_s6 = inlined_call_operand.vmem [shape: f32[1,128], index: 6, kind: input, shape index: {}]   ;;  %s715_s7 = inlined_call_operand.vmem [shape: f32[16,128], index: 7, kind: output, shape index: {}]  }
   0x1   :  { %13 = vsyncpa [#allocation5], 0  ;;  %s611_s24 = smov [#allocation2]   ;;  %s563_s28 = scalar_lea.hbm %s711_s3, 2048 }
   0x2   :  { %s25_s25 = sshll.u32 %s611_s24, 4  ;;  %p564_p0 = scmp.ne.s32.totalorder %s711_s3, %s563_s28  ;;  %s26_s25 = int_to_ptr.vmem [resolvable:$true] %s25_s25 }
   0x3   :  { %p567_p1 = scmp.lt.u32.totalorder %s563_s28, %s711_s3 }
   0x5   :  { %p569_p2 = pnand %p567_p1, %p564_p0 }
   0x7   :  { %572 = shalt.err (!%p569_p2)
}
   0x8   :  { %s573_s10 = scalar_lea.vmem %s26_s25, 2048  ;;  %p578_p4 = scmp.lt.s32.totalorder %s26_s25, %s26_s25 }
   0x9   :  { %p574_p3 = scmp.ne.s32.totalorder %s26_s25, %s573_s10  ;;  %p579_p5 = scmp.lt.s32.totalorder %s573_s10, %s573_s10 }
   0xb   :  { %p580_p6 = por %p579_p5, %p578_p4 }
   0xd   :  { %p581_p7 = pnand %p580_p6, %p574_p3 }
   0xf   :  { %584 = shalt.err (!%p581_p7)
}
  0x10   :  { %s612_s11 = smov 128   ;;  %s613_s12 = smov 8  }
  0x11   :  { %31 = dma.hbm_to_vmem [thread:$0]  %s711_s3, 2048, %s26_s25, [#allocation3], %s612_s11, %s612_s11, %s613_s12  }
  0x12   :  { %s614_s15 = smov [#allocation4]   ;;  %s585_s19 = scalar_lea.hbm %s713_s5, 2048 }
  0x13   :  { %s39_s16 = sshll.u32 %s614_s15, 4  ;;  %p586_p8 = scmp.ne.s32.totalorder %s713_s5, %s585_s19  ;;  %s40_s16 = int_to_ptr.vmem [resolvable:$true] %s39_s16 }
  0x14   :  { %p589_p9 = scmp.lt.u32.totalorder %s585_s19, %s713_s5 }
  0x16   :  { %p591_p10 = pnand %p589_p9, %p586_p8 }
  0x18   :  { %594 = shalt.err (!%p591_p10)
}
  0x19   :  { %s595_s24 = scalar_lea.vmem %s40_s16, 2048  ;;  %p600_p12 = scmp.lt.s32.totalorder %s40_s16, %s40_s16 }
  0x1a   :  { %p596_p11 = scmp.ne.s32.totalorder %s40_s16, %s595_s24  ;;  %p601_p13 = scmp.lt.s32.totalorder %s595_s24, %s595_s24 }
  0x1c   :  { %p602_p0 = por %p601_p13, %p600_p12 }
  0x1e   :  { %p603_p1 = pnand %p602_p0, %p596_p11 }
  0x20   :  { %606 = shalt.err (!%p603_p1)
}
  0x21   :  { %45 = dma.hbm_to_vmem [thread:$0]  %s713_s5, 2048, %s40_s16, [#allocation5], %s612_s11, %s612_s11, %s613_s12  }
  0x22   :  { %607 = dma.done.wait [#allocation3], 2048  }
  0x23   :  { %608 = vsyncadd [#allocation3], 4294965248 }
  0x24   :  { %609 = dma.done.wait [#allocation5], 2048  }
  0x25   :  { %610 = vsyncadd [#allocation5], 4294965248  ;;  %vm65_vm0 = vcmask 130048   ;;  %v56_v0 = vld [vmem:[%s709_s1] sm:$0xff]  ;;  %v57_v1 = vld [vmem:[%s709_s1 + $0x8] sm:$0xff] }
  0x26   :  { %v54_v2 = vld [vmem:[%s708_s0] sm:$0xff]  ;;  %v487_v3 = vpack.c.bf16 %v57_v1, %v56_v0  ;;  %v154_v5 = vld [vmem:[#allocation2 + $0x8] sm:$0xff]  ;;  %v155_v7 = vld [vmem:[#allocation2 + $0x10] sm:$0xff] }
  0x27   :  { %414 = vmatprep.mubr.msk.f32.mxu0 %vm65_vm0, %v54_v2  ;;  %v153_v4 = vld [vmem:[#allocation2] sm:$0xff]  ;;  %v156_v8 = vld [vmem:[#allocation2 + $0x18] sm:$0xff]  ;;  %v158_v11 = vld [vmem:[#allocation2 + $0x28] sm:$0xff] }
  0x28   :  { %v491_v6 = vpack.c.bf16 %v154_v5, %v153_v4  ;;  %488 = vmatprep.subr.bf16.mxu0 %v487_v3  ;;  %v495_v9 = vpack.c.bf16 %v156_v8, %v155_v7  ;;  %v157_v10 = vld [vmem:[#allocation2 + $0x20] sm:$0xff]  ;;  %v55_v12 = vld [vmem:[%s708_s0 + $0x8] sm:$0xff]  ;;  %v159_v14 = vld [vmem:[#allocation2 + $0x30] sm:$0xff] }
  0x29   :  { %490 = vmatpush3.bf16.msra.mxu0 %v487_v3  ;;  %v499_v13 = vpack.c.bf16 %v158_v11, %v157_v10  ;;  %v160_v15 = vld [vmem:[#allocation2 + $0x38] sm:$0xff]  ;;  %v161_v17 = vld [vmem:[#allocation2 + $0x40] sm:$0xff]  ;;  %v162_v18 = vld [vmem:[#allocation2 + $0x48] sm:$0xff] }
  0x2a   :  { %492 = vmatprep.subr.bf16.mxu1 %v491_v6  ;;  %v503_v16 = vpack.c.bf16 %v160_v15, %v159_v14  ;;  %v507_v19 = vpack.c.bf16 %v162_v18, %v161_v17  ;;  %v163_v20 = vld [vmem:[#allocation2 + $0x50] sm:$0xff]  ;;  %v164_v21 = vld [vmem:[#allocation2 + $0x58] sm:$0xff]  ;;  %v165_v23 = vld [vmem:[#allocation2 + $0x60] sm:$0xff] }
  0x2b   :  { %494 = vmatpush3.bf16.msra.mxu1 %v491_v6  ;;  %v511_v22 = vpack.c.bf16 %v164_v21, %v163_v20  ;;  %v166_v24 = vld [vmem:[#allocation2 + $0x68] sm:$0xff]  ;;  %v167_v26 = vld [vmem:[#allocation2 + $0x70] sm:$0xff]  ;;  %v168_v27 = vld [vmem:[#allocation2 + $0x78] sm:$0xff] }
  0x2c   :  { %496 = vmatprep.subr.bf16.mxu1 %v495_v9  ;;  %415 = vmatmul.mubr.msk.f32.vlgmr.msra.gmra.mrb[0].mxu0 %vm65_vm0, %v55_v12  ;;  %v515_v25 = vpack.c.bf16 %v166_v24, %v165_v23  ;;  %v519_v28 = vpack.c.bf16 %v168_v27, %v167_v26  ;;  %v257_v29 = vld [vmem:[#allocation4] sm:$0xff]  ;;  %v258_v30 = vld [vmem:[#allocation4 + $0x8] sm:$0xff]  ;;  %v259_v31 = vld [vmem:[#allocation4 + $0x10] sm:$0xff] }
  0x2d   :  { %v523_v32 = vpack.c.bf16 %v258_v30, %v257_v29  ;;  %v260_v33 = vld [vmem:[#allocation4 + $0x18] sm:$0xff]  ;;  %v261_v35 = vld [vmem:[#allocation4 + $0x20] sm:$0xff]  ;;  %v262_v36 = vld [vmem:[#allocation4 + $0x28] sm:$0xff] }
  0x2e   :  { %v527_v34 = vpack.c.bf16 %v260_v33, %v259_v31  ;;  %v531_v37 = vpack.c.bf16 %v262_v36, %v261_v35  ;;  %v263_v38 = vld [vmem:[#allocation4 + $0x30] sm:$0xff]  ;;  %v264_v39 = vld [vmem:[#allocation4 + $0x38] sm:$0xff]  ;;  %v265_v41 = vld [vmem:[#allocation4 + $0x40] sm:$0xff] }
  0x2f   :  { %498 = vmatpush3.bf16.msra.mxu1 %v495_v9  ;;  %524 = vmatprep.subr.bf16.mxu0 %v523_v32  ;;  %v535_v40 = vpack.c.bf16 %v264_v39, %v263_v38  ;;  %v266_v42 = vld [vmem:[#allocation4 + $0x48] sm:$0xff]  ;;  %v267_v44 = vld [vmem:[#allocation4 + $0x50] sm:$0xff]  ;;  %v268_v45 = vld [vmem:[#allocation4 + $0x58] sm:$0xff] }
  0x30   :  { %500 = vmatprep.subr.bf16.mxu1 %v499_v13  ;;  %526 = vmatpush3.bf16.msra.mxu0 %v523_v32  ;;  %v539_v43 = vpack.c.bf16 %v266_v42, %v265_v41  ;;  %v543_v46 = vpack.c.bf16 %v268_v45, %v267_v44  ;;  %v365_v47 = vld [vmem:[%s710_s2] ss:$0 sm:$0xff]  ;;  %v270_v57 = vld [vmem:[#allocation4 + $0x68] sm:$0xff]  ;;  %v271_v59 = vld [vmem:[#allocation4 + $0x70] sm:$0xff] }
  0x31   :  { %528 = vmatprep.subr.bf16.mxu0 %v527_v34  ;;  %v269_v56 = vld [vmem:[#allocation4 + $0x60] sm:$0xff]  ;;  %v272_v60 = vld [vmem:[#allocation4 + $0x78] sm:$0xff] }
  0x32   :  { %v547_v58 = vpack.c.bf16 %v270_v57, %v269_v56  ;;  %v551_v61 = vpack.c.bf16 %v272_v60, %v271_v59  ;;  %v368_v62 = vld [vmem:[%s712_s4] ss:$0 sm:$0xff] }
  0x33   :  { %502 = vmatpush3.bf16.msra.mxu1 %v499_v13  ;;  %v369_v7 = vld [vmem:[%s714_s6] ss:$0 sm:$0xff] }
  0x34   :  { %504 = vmatprep.subr.bf16.mxu1 %v503_v16  ;;  %530 = vmatpush3.bf16.msra.mxu0 %v527_v34 }
  0x35   :  { %532 = vmatprep.subr.bf16.mxu0 %v531_v37 }
  0x37   :  { %506 = vmatpush3.bf16.msra.mxu1 %v503_v16 }
  0x38   :  { %508 = vmatprep.subr.bf16.mxu1 %v507_v19  ;;  %534 = vmatpush3.bf16.msra.mxu0 %v531_v37 }
  0x39   :  { %536 = vmatprep.subr.bf16.mxu0 %v535_v40 }
  0x3b   :  { %510 = vmatpush3.bf16.msra.mxu1 %v507_v19 }
  0x3c   :  { %512 = vmatprep.subr.bf16.mxu1 %v511_v22  ;;  %538 = vmatpush3.bf16.msra.mxu0 %v535_v40 }
  0x3d   :  { %540 = vmatprep.subr.bf16.mxu0 %v539_v43 }
  0x3f   :  { %514 = vmatpush3.bf16.msra.mxu1 %v511_v22 }
  0x40   :  { %516 = vmatprep.subr.bf16.mxu1 %v515_v25  ;;  %542 = vmatpush3.bf16.msra.mxu0 %v539_v43 }
  0x41   :  { %544 = vmatprep.subr.bf16.mxu0 %v543_v46 }
  0x43   :  { %518 = vmatpush3.bf16.msra.mxu1 %v515_v25 }
  0x44   :  { %520 = vmatprep.subr.bf16.mxu1 %v519_v28  ;;  %546 = vmatpush3.bf16.msra.mxu0 %v543_v46 }
  0x45   :  { %548 = vmatprep.subr.bf16.mxu0 %v547_v58 }
  0x47   :  { %522 = vmatpush3.bf16.msra.mxu1 %v519_v28 }
  0x48   :  { %550 = vmatpush3.bf16.msra.mxu0 %v547_v58 }
  0x49   :  { %552 = vmatprep.subr.bf16.mxu0 %v551_v61 }
  0x4c   :  { %554 = vmatpush3.bf16.msra.mxu0 %v551_v61 }
  0xff   :  { %v416_v48 = vpop.f32.mrb[0].mxu0 }
 0x100   :  { %v144_v49 = vadd.f32 %v416_v48, %v365_v47  ;;  %v138_v50 = vpop.f32.mrb[1].mxu0 }
 0x101   :  { %v139_v51 = vadd.f32 %v365_v47, %v138_v50 }
 0x102   :  { %v150_v52 = vmul.f32 0.01, %v144_v49  ;;  %vm148_vm2 = vcmp.gt.f32.partialorder %v144_v49, 0.0 }
 0x103   :  { %vm147_vm1 = vcmp.gt.f32.partialorder %v139_v51, 0.0  ;;  %v149_v53 = vmul.f32 0.01, %v139_v51 }
 0x104   :  { %v152_v55 = vsel %vm148_vm2, %v144_v49, %v150_v52 }
 0x105   :  { %v151_v54 = vsel %vm147_vm1, %v139_v51, %v149_v53 }
 0x106   :  { %449 = vmatprep.mubr.f32.mxu1 %v151_v54 }
 0x107   :  { %450 = vmatmul.mubr.f32.vlgmr.msra.gmra.mrb[0].mxu1 %v152_v55 }
 0x1da   :  { %v451_v63 = vpop.f32.mrb[0].mxu1 }
 0x1db   :  { %v248_v0 = vadd.f32 %v451_v63, %v368_v62  ;;  %v242_v1 = vpop.f32.mrb[1].mxu1 }
 0x1dc   :  { %v243_v2 = vadd.f32 %v368_v62, %v242_v1 }
 0x1dd   :  { %v254_v3 = vmul.f32 0.01, %v248_v0  ;;  %vm252_vm3 = vcmp.gt.f32.partialorder %v248_v0, 0.0 }
 0x1de   :  { %v253_v4 = vmul.f32 0.01, %v243_v2  ;;  %vm251_vm4 = vcmp.gt.f32.partialorder %v243_v2, 0.0 }
 0x1df   :  { %v256_v6 = vsel %vm252_vm3, %v248_v0, %v254_v3 }
 0x1e0   :  { %v255_v5 = vsel %vm251_vm4, %v243_v2, %v253_v4 }
 0x1e1   :  { %484 = vmatprep.mubr.f32.mxu0 %v255_v5 }
 0x1e2   :  { %485 = vmatmul.mubr.f32.vlgmr.msra.gmra.mrb[2].mxu0 %v256_v6 }
 0x2b5   :  { %v486_v8 = vpop.f32.mrb[2].mxu0 }
 0x2b6   :  { %v352_v9 = vadd.f32 %v486_v8, %v369_v7  ;;  %v346_v10 = vpop.f32.mrb[3].mxu0 }
 0x2b7   :  { %v347_v11 = vadd.f32 %v369_v7, %v346_v10 }
 0x2b8   :  { %559 = vtanh.f32 %v352_v9 }
 0x2b9   :  { %561 = vtanh.f32 %v347_v11 }
 0x2c2   :  { %v560_v12 = vpop.eup %559 }
 0x2c3   :  { %v562_v13 = vpop.eup %561  ;;  %358 = vst [vmem:[%s715_s7 + $0x8] sm:$0xff] %v560_v12 }
 0x2c4   :  { %357 = vst [vmem:[%s715_s7] sm:$0xff] %v562_v13 }
 0x2c5   :  { %363 = vsyncpa [#allocation3], 1 }
 0x2c6   :  { %364 = vsyncpa [#allocation5], 1 }

</bundles_post_ra>
